<compile_context>
chip_gen: v6e
topology: v6e:2x2x1
jax: 0.10.0
libtpu: 0.0.40
codegen_flags: <defaults>
</compile_context>

<pallas_src>
import functools

import numpy as np
import jax
import jax.numpy as jnp
from jax import lax
from jax.experimental import pallas as pl
from jax.experimental.pallas import tpu as pltpu


def _pair_triplet_kernel(x_ref, tcol_ref, trow_ref, out_ref, *, margin, pair_ranges):
    # ---- L2 normalization + pairwise squared-distance matrix (one MXU matmul) ----
    x = x_ref[...]                                                   # (n, d) f32
    norm = jnp.sqrt(jnp.sum(x * x, axis=-1, keepdims=True))         # (n, 1)
    xn = x / (norm + 1e-12)
    gram = lax.dot_general(xn, xn, (((1,), (1,)), ((), ())),
                           preferred_element_type=jnp.float32)      # (n, n) = xn @ xn.T
    # ||xn_i|| == 1  =>  ||xn_i - xn_j||^2 = 2 - 2 <xn_i, xn_j>   (clamped like ref)
    dist2 = jnp.maximum(2.0 - 2.0 * gram, 1e-12)                    # (n, n)

    # Same-label mask built once for the whole batch; pair blocks are slices of it.
    peq_full = tcol_ref[...] == trow_ref[...]                       # (n, n) bool

    total = jnp.float32(0.0)
    cnt = jnp.float32(0.0)
    mgn = jnp.float32(margin)

    # Static (trace-time) loop over consecutive-image pairs; each iteration only
    # touches its (m, m) sub-block.
    for (s, e) in pair_ranges:
        m = e - s
        d2 = dist2[s:e, s:e]                                        # (m, m)
        peq = peq_full[s:e, s:e]                                    # (m, m)

        # check_pos_neg on the pair: diagonal contributes exactly m positives, so
        #   off-diagonal positive exists  <=>  pos_cnt > m
        #   at least one negative exists  <=>  pos_cnt < m*m
        pos_cnt = jnp.sum(peq.astype(jnp.float32))
        valid = jnp.logical_and(pos_cnt > jnp.float32(m),
                                pos_cnt < jnp.float32(m * m))

        # Hard positive / hard negative per row, mined on squared distances.
        # Finite sentinels: d2 in [1e-12, 4], diagonal is always a positive, and
        # for a valid pair every row has >= 1 negative, so sentinels never win.
        ap2 = jnp.max(jnp.where(peq, d2, jnp.float32(-1.0)), axis=1, keepdims=True)
        an2 = jnp.min(jnp.where(peq, jnp.float32(1e9), d2), axis=1, keepdims=True)
        hinge = jnp.maximum(jnp.sqrt(ap2) - jnp.sqrt(an2) + mgn, 0.0)  # (m, 1)

        total = total + jnp.where(valid, jnp.sum(hinge), 0.0)
        cnt = cnt + jnp.where(valid, jnp.float32(m), 0.0)

    # No valid triplet anywhere (covers the all-positive / all-negative early
    # returns as well as "no triplet in any consecutive-frame pair") -> 0.
    loss = jnp.where(cnt > 0.0, total / jnp.maximum(cnt, 1.0), jnp.float32(0.0))
    out_ref[0, 0] = loss


def pair_triplet_loss(inputs, targets, inst_num_by_img, margin=0.3):
    """inputs: (N, D) float, targets: (N,) int labels,
    inst_num_by_img: static Python list of per-image instance counts."""
    n, _ = inputs.shape
    counts = np.asarray(inst_num_by_img, dtype=np.int64)
    cum = np.cumsum(counts)
    starts_of_img = np.concatenate([[0], cum[:-1]])

    # Static [start, end) row ranges for each consecutive-image pair; pairs with
    # fewer than 2 instances can never yield a triplet, so drop them at trace time.
    pair_ranges = []
    for p in range(len(inst_num_by_img) - 1):
        s, e = int(starts_of_img[p]), int(cum[p + 1])
        if e - s >= 2:
            pair_ranges.append((s, e))
    if not pair_ranges:
        return jnp.float32(0.0)

    t = targets.astype(jnp.int32)
    t_col = t.reshape(n, 1)
    t_row = t.reshape(1, n)

    kernel = functools.partial(_pair_triplet_kernel, margin=float(margin),
                               pair_ranges=tuple(pair_ranges))

    loss2d = pl.pallas_call(
        kernel,
        out_shape=jax.ShapeDtypeStruct((1, 1), jnp.float32),
        in_specs=[
            pl.BlockSpec(memory_space=pltpu.MemorySpace.VMEM),
            pl.BlockSpec(memory_space=pltpu.MemorySpace.VMEM),
            pl.BlockSpec(memory_space=pltpu.MemorySpace.VMEM),
        ],
        out_specs=pl.BlockSpec(memory_space=pltpu.MemorySpace.SMEM),
    )(inputs.astype(jnp.float32), t_col, t_row)
    return loss2d[0, 0]


def _reference_loss(x, targets, inst_num_by_img, margin):
    """Pure numpy port of the PyTorch forward (silent correctness check)."""
    x = x / (np.linalg.norm(x, axis=-1, keepdims=True) + 1e-12)
    n = x.shape[0]
    sq = (x ** 2).sum(1, keepdims=True)
    dist = sq + sq.T - 2.0 * (x @ x.T)
    dist = np.sqrt(np.clip(dist, 1e-12, None))
    eq = targets[:, None] == targets[None, :]
    offd = ~np.eye(n, dtype=bool)
    if not (eq & offd).any():      # negatives only
        return 0.0
    if eq.all():                   # positives only
        return 0.0
    cum = np.cumsum(inst_num_by_img)
    starts = np.concatenate([[0], cum[:-1]])
    aps, ans = [], []
    for p in range(len(inst_num_by_img) - 1):
        s, e = int(starts[p]), int(cum[p + 1])
        peq, pd = eq[s:e, s:e], dist[s:e, s:e]
        m = e - s
        od = ~np.eye(m, dtype=bool)
        if not (peq & od).any():
            continue
        if peq.all():
            continue
        for i in range(m):
            aps.append(pd[i][peq[i]].max())
            ans.append(pd[i][~peq[i]].min())
    if not aps:
        return 0.0
    aps, ans = np.array(aps), np.array(ans)
    return float(np.mean(np.maximum(aps - ans + margin, 0.0)))


if __name__ == "__main__":
    key = jax.random.PRNGKey(0)
    feat_dim = 32
    inst_num_by_img = [3, 3, 2]          # instances per image (3 frames)
    n = sum(inst_num_by_img)
    # track ids per instance, grouped by image: frames share ids -> triplets exist
    targets = jnp.array([0, 1, 2, 0, 1, 3, 0, 2], dtype=jnp.int32)
    x = jax.random.normal(key, (n, feat_dim), dtype=jnp.float32)

    loss = pair_triplet_loss(x, targets, inst_num_by_img, margin=0.3)
    loss = jax.block_until_ready(loss)

    ref = _reference_loss(np.asarray(x), np.asarray(targets), inst_num_by_img, 0.3)
    assert abs(float(loss) - ref) < 1e-4, (float(loss), ref)
    print("KERNEL_OK")
</pallas_src>

<mosaic_0001>
module attributes {stable_mosaic.version = 11 : i64} {
  func.func @_pair_triplet_kernel(%arg0: memref<8x32xf32, #tpu.memory_space<vmem>>, %arg1: memref<8x1xi32, #tpu.memory_space<vmem>>, %arg2: memref<1x8xi32, #tpu.memory_space<vmem>>, %arg3: memref<1x1xf32, #tpu.memory_space<smem>>) attributes {dimension_semantics = [], scalar_prefetch = 0 : i64, scratch_operands = 0 : i64, tpu.core_type = #tpu.core_type<tc>} {
    %c0 = arith.constant 0 : index
    %c0_0 = arith.constant 0 : index
    %0 = vector.load %arg0[%c0, %c0_0] : memref<8x32xf32, #tpu.memory_space<vmem>>, vector<8x32xf32>
    %1 = arith.mulf %0, %0 : vector<8x32xf32>
    %cst = arith.constant dense<0.000000e+00> : vector<8xf32>
    %2 = vector.multi_reduction <add>, %1, %cst [1] : vector<8x32xf32> to vector<8xf32>
    %3 = vector.shape_cast %2 : vector<8xf32> to vector<8x1xf32>
    %4 = math.sqrt %3 : vector<8x1xf32>
    %cst_1 = arith.constant 9.99999996E-13 : f32
    %5 = vector.broadcast %cst_1 : f32 to vector<8x1xf32>
    %6 = arith.addf %4, %5 : vector<8x1xf32>
    %7 = vector.broadcast %6 : vector<8x1xf32> to vector<8x32xf32>
    %8 = arith.divf %0, %7 : vector<8x32xf32>
    %cst_2 = arith.constant dense<0.000000e+00> : vector<8x8xf32>
    %9 = tpu.matmul %8, %8, %cst_2 {dimension_numbers = #tpu.dot_dimension_numbers<[1], [1], [0], [0], [0, 0, 1, 0], [], []>} : vector<8x32xf32>, vector<8x32xf32>, vector<8x8xf32> -> vector<8x8xf32>
    %cst_3 = arith.constant 2.000000e+00 : f32
    %10 = vector.broadcast %cst_3 : f32 to vector<8x8xf32>
    %11 = arith.mulf %10, %9 : vector<8x8xf32>
    %cst_4 = arith.constant 2.000000e+00 : f32
    %12 = vector.broadcast %cst_4 : f32 to vector<8x8xf32>
    %13 = arith.subf %12, %11 : vector<8x8xf32>
    %cst_5 = arith.constant 9.99999996E-13 : f32
    %14 = vector.broadcast %cst_5 : f32 to vector<8x8xf32>
    %15 = arith.maximumf %13, %14 : vector<8x8xf32>
    %c0_6 = arith.constant 0 : index
    %c0_7 = arith.constant 0 : index
    %16 = vector.load %arg1[%c0_6, %c0_7] : memref<8x1xi32, #tpu.memory_space<vmem>>, vector<8x1xi32>
    %c0_8 = arith.constant 0 : index
    %c0_9 = arith.constant 0 : index
    %17 = vector.load %arg2[%c0_8, %c0_9] : memref<1x8xi32, #tpu.memory_space<vmem>>, vector<1x8xi32>
    %18 = vector.broadcast %16 : vector<8x1xi32> to vector<8x8xi32>
    %19 = vector.broadcast %17 : vector<1x8xi32> to vector<8x8xi32>
    %20 = arith.cmpi eq, %18, %19 : vector<8x8xi32>
    %21 = vector.extract_strided_slice %15 {offsets = [0, 0], sizes = [6, 6], strides = [1, 1]} : vector<8x8xf32> to vector<6x6xf32>
    %22 = vector.extract_strided_slice %20 {offsets = [0, 0], sizes = [6, 6], strides = [1, 1]} : vector<8x8xi1> to vector<6x6xi1>
    %23 = arith.extui %22 : vector<6x6xi1> to vector<6x6xi32>
    %24 = arith.sitofp %23 : vector<6x6xi32> to vector<6x6xf32>
    %25 = vector.shape_cast %24 : vector<6x6xf32> to vector<1x6x6xf32>
    %cst_10 = arith.constant dense<0.000000e+00> : vector<1xf32>
    %26 = vector.multi_reduction <add>, %25, %cst_10 [1, 2] : vector<1x6x6xf32> to vector<1xf32>
    %27 = vector.shape_cast %26 : vector<1xf32> to vector<1x1x1xf32>
    %28 = vector.extract %27[0, 0, 0] : f32 from vector<1x1x1xf32>
    %cst_11 = arith.constant 6.000000e+00 : f32
    %29 = arith.cmpf ogt, %28, %cst_11 : f32
    %cst_12 = arith.constant 3.600000e+01 : f32
    %30 = arith.cmpf olt, %28, %cst_12 : f32
    %31 = arith.andi %29, %30 : i1
    %cst_13 = arith.constant -1.000000e+00 : f32
    %32 = vector.broadcast %cst_13 : f32 to vector<6x6xf32>
    %33 = arith.select %22, %21, %32 : vector<6x6xi1>, vector<6x6xf32>
    %cst_14 = arith.constant dense<0xFF800000> : vector<6xf32>
    %34 = vector.multi_reduction <maximumf>, %33, %cst_14 [1] : vector<6x6xf32> to vector<6xf32>
    %35 = vector.shape_cast %34 : vector<6xf32> to vector<6x1xf32>
    %cst_15 = arith.constant 1.000000e+09 : f32
    %36 = vector.broadcast %cst_15 : f32 to vector<6x6xf32>
    %37 = arith.select %22, %36, %21 : vector<6x6xi1>, vector<6x6xf32>
    %cst_16 = arith.constant dense<0x7F800000> : vector<6xf32>
    %38 = vector.multi_reduction <minimumf>, %37, %cst_16 [1] : vector<6x6xf32> to vector<6xf32>
    %39 = vector.shape_cast %38 : vector<6xf32> to vector<6x1xf32>
    %40 = math.sqrt %35 : vector<6x1xf32>
    %41 = math.sqrt %39 : vector<6x1xf32>
    %42 = arith.subf %40, %41 : vector<6x1xf32>
    %cst_17 = arith.constant 3.000000e-01 : f32
    %43 = vector.broadcast %cst_17 : f32 to vector<6x1xf32>
    %44 = arith.addf %42, %43 : vector<6x1xf32>
    %cst_18 = arith.constant 0.000000e+00 : f32
    %45 = vector.broadcast %cst_18 : f32 to vector<6x1xf32>
    %46 = arith.maximumf %44, %45 : vector<6x1xf32>
    %47 = vector.shape_cast %46 : vector<6x1xf32> to vector<1x6x1xf32>
    %cst_19 = arith.constant dense<0.000000e+00> : vector<1xf32>
    %48 = vector.multi_reduction <add>, %47, %cst_19 [1, 2] : vector<1x6x1xf32> to vector<1xf32>
    %49 = vector.shape_cast %48 : vector<1xf32> to vector<1x1x1xf32>
    %50 = vector.extract %49[0, 0, 0] : f32 from vector<1x1x1xf32>
    %cst_20 = arith.constant 0.000000e+00 : f32
    %51 = arith.select %31, %50, %cst_20 : f32
    %cst_21 = arith.constant 0.000000e+00 : f32
    %52 = arith.addf %cst_21, %51 : f32
    %cst_22 = arith.constant 6.000000e+00 : f32
    %cst_23 = arith.constant 0.000000e+00 : f32
    %53 = arith.select %31, %cst_22, %cst_23 : f32
    %cst_24 = arith.constant 0.000000e+00 : f32
    %54 = arith.addf %cst_24, %53 : f32
    %55 = vector.extract_strided_slice %15 {offsets = [3, 3], sizes = [5, 5], strides = [1, 1]} : vector<8x8xf32> to vector<5x5xf32>
    %56 = vector.extract_strided_slice %20 {offsets = [3, 3], sizes = [5, 5], strides = [1, 1]} : vector<8x8xi1> to vector<5x5xi1>
    %57 = arith.extui %56 : vector<5x5xi1> to vector<5x5xi32>
    %58 = arith.sitofp %57 : vector<5x5xi32> to vector<5x5xf32>
    %59 = vector.shape_cast %58 : vector<5x5xf32> to vector<1x5x5xf32>
    %cst_25 = arith.constant dense<0.000000e+00> : vector<1xf32>
    %60 = vector.multi_reduction <add>, %59, %cst_25 [1, 2] : vector<1x5x5xf32> to vector<1xf32>
    %61 = vector.shape_cast %60 : vector<1xf32> to vector<1x1x1xf32>
    %62 = vector.extract %61[0, 0, 0] : f32 from vector<1x1x1xf32>
    %cst_26 = arith.constant 5.000000e+00 : f32
    %63 = arith.cmpf ogt, %62, %cst_26 : f32
    %cst_27 = arith.constant 2.500000e+01 : f32
    %64 = arith.cmpf olt, %62, %cst_27 : f32
    %65 = arith.andi %63, %64 : i1
    %cst_28 = arith.constant -1.000000e+00 : f32
    %66 = vector.broadcast %cst_28 : f32 to vector<5x5xf32>
    %67 = arith.select %56, %55, %66 : vector<5x5xi1>, vector<5x5xf32>
    %cst_29 = arith.constant dense<0xFF800000> : vector<5xf32>
    %68 = vector.multi_reduction <maximumf>, %67, %cst_29 [1] : vector<5x5xf32> to vector<5xf32>
    %69 = vector.shape_cast %68 : vector<5xf32> to vector<5x1xf32>
    %cst_30 = arith.constant 1.000000e+09 : f32
    %70 = vector.broadcast %cst_30 : f32 to vector<5x5xf32>
    %71 = arith.select %56, %70, %55 : vector<5x5xi1>, vector<5x5xf32>
    %cst_31 = arith.constant dense<0x7F800000> : vector<5xf32>
    %72 = vector.multi_reduction <minimumf>, %71, %cst_31 [1] : vector<5x5xf32> to vector<5xf32>
    %73 = vector.shape_cast %72 : vector<5xf32> to vector<5x1xf32>
    %74 = math.sqrt %69 : vector<5x1xf32>
    %75 = math.sqrt %73 : vector<5x1xf32>
    %76 = arith.subf %74, %75 : vector<5x1xf32>
    %cst_32 = arith.constant 3.000000e-01 : f32
    %77 = vector.broadcast %cst_32 : f32 to vector<5x1xf32>
    %78 = arith.addf %76, %77 : vector<5x1xf32>
    %cst_33 = arith.constant 0.000000e+00 : f32
    %79 = vector.broadcast %cst_33 : f32 to vector<5x1xf32>
    %80 = arith.maximumf %78, %79 : vector<5x1xf32>
    %81 = vector.shape_cast %80 : vector<5x1xf32> to vector<1x5x1xf32>
    %cst_34 = arith.constant dense<0.000000e+00> : vector<1xf32>
    %82 = vector.multi_reduction <add>, %81, %cst_34 [1, 2] : vector<1x5x1xf32> to vector<1xf32>
    %83 = vector.shape_cast %82 : vector<1xf32> to vector<1x1x1xf32>
    %84 = vector.extract %83[0, 0, 0] : f32 from vector<1x1x1xf32>
    %cst_35 = arith.constant 0.000000e+00 : f32
    %85 = arith.select %65, %84, %cst_35 : f32
    %86 = arith.addf %52, %85 : f32
    %cst_36 = arith.constant 5.000000e+00 : f32
    %cst_37 = arith.constant 0.000000e+00 : f32
    %87 = arith.select %65, %cst_36, %cst_37 : f32
    %88 = arith.addf %54, %87 : f32
    %cst_38 = arith.constant 0.000000e+00 : f32
    %89 = arith.cmpf ogt, %88, %cst_38 : f32
    %cst_39 = arith.constant 1.000000e+00 : f32
    %90 = arith.maximumf %88, %cst_39 : f32
    %91 = arith.divf %86, %90 : f32
    %cst_40 = arith.constant 0.000000e+00 : f32
    %92 = arith.select %89, %91, %cst_40 : f32
    %c0_41 = arith.constant 0 : index
    %c0_42 = arith.constant 0 : index
    %93 = memref.load %arg3[%c0_41, %c0_42] : memref<1x1xf32, #tpu.memory_space<smem>>
    memref.store %92, %arg3[%c0_41, %c0_42] : memref<1x1xf32, #tpu.memory_space<smem>>
    return
  }
}

</mosaic_0001>

<bundles_post_ra>
// kernel: tpu_custom_call.1
= control target key start
LH: loop header
LB: loop body
LE: loop exit
PB: predicated region body
PF: predicated region fallthrough
CT: control target
= control target key end

     0   :  { %vm17_vm0 = vcmask 261120   ;;  %s363_s0 = inlined_call_operand.vmem [shape: f32[8,32], index: 0, kind: input, shape index: {}]   ;;  %s364_s1 = inlined_call_operand.vmem [shape: s32[8,1], index: 1, kind: input, shape index: {}]   ;;  %s365_s2 = inlined_call_operand.vmem [shape: s32[1,8], index: 2, kind: input, shape index: {}]   ;;  %s366_s3 = inlined_call_operand.hbm [shape: f32[1,1], index: 3, kind: output, shape index: {}]  }
   0x1   :  { %v15_v0 = vld [vmem:[%s363_s0] sm:$0xff] }
   0x2   :  { %8 = vsyncpa [#allocation3], 0  ;;  %v16_v1 = vmul.f32 %v15_v0, %v15_v0  ;;  %v314_v3 = vmov 0.0   ;;  %vm315_vm1 = vmmov 0   ;;  %v107_v4 = vld [vmem:[%s364_s1] sm:$0xff]  ;;  %v316_v5 = vmov 0  }
   0x3   :  { %268 = vmatprep.subr.mxu0 %v314_v3  ;;  %270 = vmatprep.mubr.msk.f32.mxu0 %vm315_vm1, %v314_v3  ;;  %v260_v17 = vld [vmem:[%s365_s2] ss:$0 sm:$0xff]  ;;  %vm194_vm5 = vcmask 64539   ;;  %vm119_vm6 = vcmask 46080   ;;  %s317_s16 = smov 125   ;;  %vm159_vm11 = vcmask 5120  }
   0x4   :  { %v18_v2 = vsel %vm17_vm0, %v16_v1, 0.0  ;;  %289 = vset.pattern.permute.xlu0 %v316_v5  ;;  %vm179_vm12 = vcmask 36864   ;;  %vm221_vm1 = vcmask 4096   ;;  %s318_s23 = smov 1.0   ;;  %s319_s29 = smov [#allocation2]  }
   0x5   :  { %19 = vadd.xlane.f32.xlu0 %v18_v2 }
  0x1b   :  { %110 = vperm.xlu0 %289, %v107_v4  }
  0x8e   :  { %v20_v6 = vpop.xlane.xlu0 %19 }
  0x8f   :  { %290 = vrsqrt.f32 %v20_v6  ;;  %vm23_vm2 = vcmp.eq.f32.partialorder %v20_v6, inf  ;;  %v26_v9 = vand.u32 2147483648, %v20_v6  ;;  %vm25_vm3 = vcmp.eq.f32.partialorder %v20_v6, 0.0 }
  0x96   :  { %v111_v18 = vpop.permute.xlu0 %110 }
  0x97   :  { %vm116_vm4 = vcmp.eq.s32.totalorder %v111_v18, %v260_v17 }
  0x98   :  { %v261_v27 = vsel %vm116_vm4, 1.0, %v314_v3 }
  0x99   :  { %v175_v28 = vrot.slane %v261_v27, 3  ;;  %v120_v30 = vsel %vm119_vm6, %v261_v27, 0.0 }
  0x9c   :  { %v291_v7 = vpop.eup %290 }
  0x9d   :  { %v22_v8 = vmul.f32 %v291_v7, %v20_v6 }
  0x9f   :  { %v24_v10 = vsel %vm23_vm2, %v20_v6, %v22_v8 }
  0xa0   :  { %v27_v11 = vsel %vm25_vm3, %v26_v9, %v24_v10 }
  0xa1   :  { %v28_v12 = vadd.f32 1e-12, %v27_v11 }
  0xa3   :  { %292 = vrcp.f32 %v28_v12 }
  0xb0   :  { %v293_v13 = vpop.eup %292 }
  0xb1   :  { %v30_v14 = vmul.f32 %v293_v13, %v15_v0 }
  0xb3   :  { %269 = vmatpush3.xpose.msk.msra.mxu0 %vm17_vm0, %v30_v14 }
  0xb6   :  { %271 = vmatmul.mubr.msk.f32.vlgmr.msra.gmra.mxu0 %vm17_vm0, %v30_v14 }
 0x176   :  { %v100_v15 = vpop.f32.mrf.mxu0 }
 0x177   :  { %v104_v16 = vmul.f32 2.0, %v100_v15 }
 0x178   :  { %v272_v19 = vpop.f32.mrf.mxu0 }
 0x179   :  { %v105_v20 = vsub.f32 2.0, %v104_v16 }
 0x17b   :  { %v106_v21 = vmax.f32 %v105_v20, 1e-12 }
 0x17d   :  { %v138_v22 = vsel %vm116_vm4, 1e+09, %v106_v21  ;;  %v134_v23 = vsel %vm116_vm4, %v106_v21, -1.0 }
 0x17e   :  { %v198_v24 = vsel %vm194_vm5, %v138_v22, inf  ;;  %v135_v25 = vsel %vm119_vm6, %v134_v23, -inf  ;;  %v139_v26 = vsel %vm119_vm6, %v138_v22, inf  ;;  %v195_v29 = vsel %vm194_vm5, %v134_v23, -inf }
 0x17f   :  { %199 = vmin.xlane.f32.xlu0 %v198_v24  ;;  %136 = vmax.xlane.f32.xlu1 %v135_v25 }
 0x183   :  { %140 = vmin.xlane.f32.xlu1 %v139_v26 }
 0x194   :  { %176 = vrot.lane.b32.xlu1 %v175_v28, %s317_s16 }
 0x1b8   :  { %196 = vmax.xlane.f32.xlu1 %v195_v29 }
 0x1bc   :  { %121 = vadd.xlane.f32.xlu1 %v120_v30 }
 0x208   :  { %v137_v31 = vpop.xlane.xlu1 %136  ;;  %v200_v49 = vpop.xlane.xlu0 %199 }
 0x209   :  { %294 = vrsqrt.f32 %v137_v31  ;;  %vm144_vm7 = vcmp.eq.f32.partialorder %v137_v31, inf  ;;  %v147_v38 = vand.u32 2147483648, %v137_v31  ;;  %vm146_vm9 = vcmp.eq.f32.partialorder %v137_v31, 0.0 }
 0x20a   :  { %vm210_vm13 = vcmp.eq.f32.partialorder %v200_v49, inf  ;;  %v213_v63 = vand.u32 2147483648, %v200_v49  ;;  %vm212_vm0 = vcmp.eq.f32.partialorder %v200_v49, 0.0 }
 0x20c   :  { %v141_v32 = vpop.xlane.xlu1 %140 }
 0x20d   :  { %296 = vrsqrt.f32 %v141_v32  ;;  %vm151_vm8 = vcmp.eq.f32.partialorder %v141_v32, inf  ;;  %v154_v39 = vand.u32 2147483648, %v141_v32  ;;  %vm153_vm10 = vcmp.eq.f32.partialorder %v141_v32, 0.0 }
 0x20e   :  { %298 = vrsqrt.f32 %v200_v49 }
 0x210   :  { %v177_v47 = vpop.permute.xlu1 %176 }
 0x211   :  { %v180_v48 = vsel %vm179_vm12, %v177_v47, 0.0 }
 0x216   :  { %v295_v33 = vpop.eup %294 }
 0x217   :  { %v143_v34 = vmul.f32 %v295_v33, %v137_v31 }
 0x219   :  { %v145_v36 = vsel %vm144_vm7, %v137_v31, %v143_v34 }
 0x21a   :  { %v297_v35 = vpop.eup %296  ;;  %v148_v41 = vsel %vm146_vm9, %v147_v38, %v145_v36 }
 0x21b   :  { %v150_v37 = vmul.f32 %v297_v35, %v141_v32  ;;  %v299_v54 = vpop.eup %298 }
 0x21c   :  { %v209_v56 = vmul.f32 %v299_v54, %v200_v49 }
 0x21d   :  { %v152_v40 = vsel %vm151_vm8, %v141_v32, %v150_v37 }
 0x21e   :  { %v155_v42 = vsel %vm153_vm10, %v154_v39, %v152_v40  ;;  %v211_v62 = vsel %vm210_vm13, %v200_v49, %v209_v56 }
 0x21f   :  { %v156_v43 = vsub.f32 %v148_v41, %v155_v42  ;;  %v214_v3 = vsel %vm212_vm0, %v213_v63, %v211_v62 }
 0x221   :  { %v157_v44 = vadd.f32 0.3, %v156_v43 }
 0x223   :  { %v158_v45 = vmax.f32 %v157_v44, 0.0 }
 0x225   :  { %v160_v46 = vsel %vm159_vm11, %v158_v45, 0.0 }
 0x226   :  { %161 = vadd.xlane.f32.xlu1 %v160_v46 }
 0x22a   :  { %181 = vadd.xlane.f32.xlu1 %v180_v48 }
 0x241   :  { %v197_v50 = vpop.xlane.xlu1 %196 }
 0x242   :  { %300 = vrsqrt.f32 %v197_v50  ;;  %vm203_vm14 = vcmp.eq.f32.partialorder %v197_v50, inf  ;;  %v206_v0 = vand.u32 2147483648, %v197_v50  ;;  %vm205_vm15 = vcmp.eq.f32.partialorder %v197_v50, 0.0 }
 0x245   :  { %v122_v51 = vpop.xlane.xlu1 %121 }
 0x246   :  { %v123_v52 = vrot.slane %v122_v51, 4 }
 0x248   :  { %v124_v53 = vadd.f32 %v123_v52, %v122_v51 }
 0x24a   :  { %v125_v55 = vrot.slane %v124_v53, 2 }
 0x24c   :  { %v126_v57 = vadd.f32 %v125_v55, %v124_v53 }
 0x24e   :  { %v127_v58 = vrot.slane %v126_v57, 1 }
 0x24f   :  { %v301_v59 = vpop.eup %300 }
 0x250   :  { %v128_v60 = vadd.f32 %v127_v58, %v126_v57  ;;  %v202_v61 = vmul.f32 %v301_v59, %v197_v50 }
 0x252   :  { %273 = vpush %v128_v60  ;;  %v204_v1 = vsel %vm203_vm14, %v197_v50, %v202_v61 }
 0x253   :  { %v207_v2 = vsel %vm205_vm15, %v206_v0, %v204_v1 }
 0x254   :  { %v215_v4 = vsub.f32 %v207_v2, %v214_v3 }
 0x256   :  { %v216_v5 = vadd.f32 0.3, %v215_v4 }
 0x258   :  { %v217_v6 = vmax.f32 %v216_v5, 0.0 }
 0x25a   :  { %v219_v7 = vrot.slane %v217_v6, 3 }
 0x25c   :  { %v222_v8 = vsel %vm221_vm1, %v219_v7, 0.0 }
 0x25d   :  { %223 = vadd.xlane.f32.xlu1 %v222_v8 }
 0x283   :  { %s274_s2 = spop %273 }
 0x284   :  { %p130_p0 = scmp.gt.f32.partialorder %s274_s2, 6.0  ;;  %p131_p1 = scmp.lt.f32.partialorder %s274_s2, 36.0 }
 0x286   :  { %p352_p2 = pnand %p131_p1, %p130_p0 }
 0x288   :  { %s263_s20 = scalar_select %p352_p2, 0.0, 6.0 }
 0x2af   :  { %v162_v9 = vpop.xlane.xlu1 %161 }
 0x2b0   :  { %v163_v10 = vrot.slane %v162_v9, 4 }
 0x2b2   :  { %v164_v11 = vadd.f32 %v163_v10, %v162_v9 }
 0x2b3   :  { %v182_v12 = vpop.xlane.xlu1 %181 }
 0x2b4   :  { %v165_v13 = vrot.slane %v164_v11, 2  ;;  %v183_v14 = vrot.slane %v182_v12, 4 }
 0x2b6   :  { %v184_v15 = vadd.f32 %v183_v14, %v182_v12  ;;  %v166_v16 = vadd.f32 %v165_v13, %v164_v11 }
 0x2b8   :  { %v185_v17 = vrot.slane %v184_v15, 2  ;;  %v167_v18 = vrot.slane %v166_v16, 1 }
 0x2ba   :  { %v168_v19 = vadd.f32 %v167_v18, %v166_v16  ;;  %v186_v20 = vadd.f32 %v185_v17, %v184_v15 }
 0x2bc   :  { %275 = vpush %v168_v19  ;;  %v187_v21 = vrot.slane %v186_v20, 1 }
 0x2be   :  { %v188_v22 = vadd.f32 %v187_v21, %v186_v20 }
 0x2c0   :  { %277 = vpush %v188_v22 }
 0x2e6   :  { %v224_v23 = vpop.xlane.xlu1 %223 }
 0x2e7   :  { %v225_v24 = vrot.slane %v224_v23, 4 }
 0x2e9   :  { %v226_v25 = vadd.f32 %v225_v24, %v224_v23 }
 0x2eb   :  { %v227_v26 = vrot.slane %v226_v25, 2 }
 0x2ed   :  { %v228_v27 = vadd.f32 %v227_v26, %v226_v25  ;;  %s276_s17 = spop %275 }
 0x2ee   :  { %s369_s17 = smov (%p352_p2, %s276_s17), 0.0 }
 0x2ef   :  { %v229_v28 = vrot.slane %v228_v27, 1 }
 0x2f1   :  { %s278_s19 = spop %277  ;;  %v230_v29 = vadd.f32 %v229_v28, %v228_v27 }
 0x2f2   :  { %p190_p3 = scmp.gt.f32.partialorder %s278_s19, 5.0  ;;  %p191_p4 = scmp.lt.f32.partialorder %s278_s19, 25.0 }
 0x2f3   :  { %279 = vpush %v230_v29 }
 0x2f4   :  { %p192_p5 = pnand %p191_p4, %p190_p3 }
 0x2f6   :  { %s265_s21 = scalar_select %p192_p5, 0.0, 5.0 }
 0x2f8   :  { %s235_s22 = sadd.f32 %s265_s21, %s263_s20 }
 0x2fa   :  { %s237_s24 = smax.f32 %s318_s23, %s235_s22  ;;  %p236_p6 = scmp.gt.f32.partialorder %s235_s22, 0.0 }
 0x2fb   :  { %v238_v30 = vstv %s237_s24 }
 0x2fc   :  { %302 = vrcp.f32 %v238_v30 }
 0x309   :  { %v303_v31 = vpop.eup %302 }
 0x30a   :  { %281 = vpush %v303_v31 }
 0x324   :  { %s280_s25 = spop %279 }
 0x325   :  { %s371_s25 = smov (%p192_p5, %s280_s25), 0.0 }
 0x326   :  { %s233_s26 = sadd.f32 %s371_s25, %s369_s17 }
 0x33b   :  { %s282_s27 = spop %281 }
 0x33c   :  { %s241_s28 = smul.f32 %s282_s27, %s233_s26 }
 0x33e   :  { %s373_s28 = smov (!%p236_p6, %s241_s28), 0.0 }
 0x33f   :  { %244 = sst [smem:[#allocation2]] %s373_s28 }
 0x340   :  { %252 = dma.smem_to_hbm %s319_s29, 16, %s366_s3, [#allocation3]  }
 0x341   :  { %312 = dma.done.wait [#allocation3], 16  }
 0x342   :  { %313 = vsyncadd [#allocation3], 4294967280 }
 0x343   :  { %256 = sfence }
 0x344   :  { %257 = vsyncpa [#allocation3], 1 }

</bundles_post_ra>
